<compile_context>
chip_gen: v5e
topology: v5e:2x2
jax: 0.10.0
libtpu: 0.0.40
codegen_flags: <defaults>
</compile_context>

<pallas_src>
import math
import functools

import jax
import jax.numpy as jnp
import numpy as np
from jax.experimental import pallas as pl
from jax.experimental.pallas import tpu as pltpu

EPS = 1e-5
_STATE_LANES = 128       # lane-dense replication width for per-head m/l state
_MB = 1024 * 1024


# ----------------------------- chip heuristics ------------------------------

def _chip_traits():
    """(wide_mxu, use_bf16_exp, is_v7x, vmem_cap_bytes) from the device kind."""
    kind = ""
    try:
        kind = jax.devices()[0].device_kind.lower()
    except Exception:
        pass
    is_v7x = ("v7" in kind) or ("7x" in kind)
    is_v6 = "v6" in kind
    wide_mxu = is_v6 or is_v7x            # 256-wide MXU
    use_bf16_exp = is_v6 or is_v7x        # bf16 EUP; v5e keeps f32 exp
    vmem_cap = (60 if is_v7x else 100) * _MB
    return wide_mxu, use_bf16_exp, is_v7x, vmem_cap


def _compiler_params(semantics, block_bytes, vmem_cap):
    limit = int(min(max(block_bytes * 3 // 2, 32 * _MB), vmem_cap))
    return pltpu.CompilerParams(dimension_semantics=semantics,
                                vmem_limit_bytes=limit)


# --------------------------------- kernels ----------------------------------

def _rms_qkv_rope_kernel(x_ref, g_ref, wq_ref, wk_ref, wv_ref, cos_ref, sin_ref,
                         q_ref, k_ref, v_ref, h1_scr, *, head_dim,
                         heads_per_tile):
    """RMSNorm (cached) -> N-tiled QKV projection -> vectorized RoPE.

    Grid = (B, num_seq_tiles, num_col_tiles); the column axis is innermost
    ("arbitrary") so rmsnorm(x) is computed once per sequence tile.  The q/k
    weights are pre-permuted so each head's RoPE even/odd components form
    contiguous halves; the rotation is two full-width VPU multiplies + one
    lane concatenate, stored with a single lane-dense store per tensor.
    """
    half = head_dim // 2

    @pl.when(pl.program_id(2) == 0)
    def _init():
        x = x_ref[0]                                          # (ts, D) f32
        ms = jnp.mean(x * x, axis=-1, keepdims=True)
        h1_scr[...] = (x * jax.lax.rsqrt(ms + EPS)
                       * g_ref[...]).astype(jnp.bfloat16)

    h1 = h1_scr[...]                                          # (ts, D) bf16
    cos = cos_ref[...]                                        # (ts, tn) f32
    sin = sin_ref[...]                                        # sign folded in

    def rotate(t):                                            # t: (ts, tn) f32
        pieces = []
        for hh in range(heads_per_tile):
            b0 = hh * head_dim
            pieces.append(t[:, b0 + half:b0 + head_dim])      # odd half
            pieces.append(t[:, b0:b0 + half])                 # even half
        swapped = jnp.concatenate(pieces, axis=-1)            # per-head swap
        return t * cos + swapped * sin

    q = jnp.dot(h1, wq_ref[...], preferred_element_type=jnp.float32)
    q_ref[0] = rotate(q).astype(jnp.bfloat16)                 # one full store
    k = jnp.dot(h1, wk_ref[...], preferred_element_type=jnp.float32)
    k_ref[0] = rotate(k).astype(jnp.bfloat16)
    v_ref[0] = jnp.dot(h1, wv_ref[...],
                       preferred_element_type=jnp.float32).astype(jnp.bfloat16)


def _flash_oproj_kernel(q_ref, k_ref, v_ref, wo_ref, res_ref, o_ref,
                        acc_scr, m_scr, l_scr, *, num_heads, head_dim, tq, tk,
                        use_bf16_exp):
    """Flash-style causal attention + o_proj + residual for one (b, q-tile).

    Grid = (B, num_q_tiles, num_kv_tiles), kv axis last ("arbitrary").
    q/k arrive RoPE-rotated and pre-scaled (1/sqrt(dh) folded into Wq), with
    per-head contiguous columns, so q.k per head is one K=head_dim dot.
    Per-head m/l state is kept lane-dense in (H, tq, 128) scratch.
    """
    ki = pl.program_id(2)
    nk = pl.num_programs(2)
    q_start = pl.program_id(1) * tq
    k_start = ki * tk

    @pl.when(ki == 0)
    def _init():
        m_scr[...] = jnp.full(m_scr.shape, -jnp.inf, dtype=m_scr.dtype)
        l_scr[...] = jnp.zeros(l_scr.shape, dtype=l_scr.dtype)
        acc_scr[...] = jnp.zeros(acc_scr.shape, dtype=acc_scr.dtype)

    def update(masked):
        q = q_ref[0]                                          # (tq, D) bf16
        k = k_ref[0]                                          # (tk, D) bf16
        v = v_ref[0]                                          # (tk, D) bf16
        if masked:
            rows = q_start + jax.lax.broadcasted_iota(jnp.int32, (tq, tk), 0)
            cols = k_start + jax.lax.broadcasted_iota(jnp.int32, (tq, tk), 1)
            causal = rows >= cols
        # TODO(synk): for num_heads >= 16 lift heads to a grid axis (or a
        # fori_loop with dynamic lane slices) to bound live ranges / spills.
        for h in range(num_heads):
            sl = slice(h * head_dim, (h + 1) * head_dim)
            s = jax.lax.dot_general(                          # q_h @ k_h^T
                q[:, sl], k[:, sl],
                dimension_numbers=(((1,), (1,)), ((), ())),
                preferred_element_type=jnp.float32)           # (tq, tk)
            if masked:
                s = jnp.where(causal, s, -jnp.inf)
            m_prev = m_scr[h][:, :1]          # full-lane load, vreg slice
            l_prev = l_scr[h][:, :1]
            m_new = jnp.maximum(m_prev, jnp.max(s, axis=-1, keepdims=True))
            alpha = jnp.exp(m_prev - m_new)                   # (tq, 1) f32
            if use_bf16_exp:
                p = jnp.exp((s - m_new).astype(jnp.bfloat16))  # bf16 EUP
                p_sum = jnp.sum(p.astype(jnp.float32), axis=-1, keepdims=True)
            else:
                p = jnp.exp(s - m_new)
                p_sum = jnp.sum(p, axis=-1, keepdims=True)
            acc_scr[:, sl] = alpha * acc_scr[:, sl] + jnp.dot(
                p.astype(v.dtype), v[:, sl], preferred_element_type=jnp.float32)
            m_scr[h] = jnp.broadcast_to(m_new, (tq, _STATE_LANES))
            l_scr[h] = jnp.broadcast_to(alpha * l_prev + p_sum,
                                        (tq, _STATE_LANES))

    # fast path: tile strictly below the diagonal -> no mask work at all
    @pl.when(k_start + tk <= q_start)
    def _below_diag():
        update(masked=False)

    # diagonal-crossing tiles need the causal mask
    @pl.when((k_start + tk > q_start) & (k_start <= q_start + tq - 1))
    def _on_diag():
        update(masked=True)

    @pl.when(ki == nk - 1)
    def _finalize():
        for h in range(num_heads):
            sl = slice(h * head_dim, (h + 1) * head_dim)
            inv = 1.0 / l_scr[h][:, :1]       # exact reciprocal (training-safe)
            acc_scr[:, sl] = acc_scr[:, sl] * inv
        attn = acc_scr[...].astype(jnp.bfloat16)              # (tq, D) merged
        o_ref[0] = res_ref[0] + jnp.dot(attn, wo_ref[...],
                                        preferred_element_type=jnp.float32)


def _rms_swiglu_kernel(mid_ref, g_ref, w1t_ref, w3t_ref, w2t_ref, o_ref,
                       h2_scr, acc_scr):
    """RMSNorm + SwiGLU + residual, tiled over d_ff (innermost grid axis)."""
    f = pl.program_id(2)
    nf = pl.num_programs(2)

    @pl.when(f == 0)
    def _init():
        x = mid_ref[0]                                        # (ts, D) f32
        ms = jnp.mean(x * x, axis=-1, keepdims=True)
        h2_scr[...] = (x * jax.lax.rsqrt(ms + EPS)
                       * g_ref[...]).astype(jnp.bfloat16)
        acc_scr[...] = x                                      # residual

    h2 = h2_scr[...]                                          # (ts, D) bf16
    a = jnp.dot(h2, w1t_ref[...], preferred_element_type=jnp.float32)
    b = jnp.dot(h2, w3t_ref[...], preferred_element_type=jnp.float32)
    gate = (a * jax.nn.sigmoid(a)) * b
    acc_scr[...] += jnp.dot(gate.astype(jnp.bfloat16), w2t_ref[...],
                            preferred_element_type=jnp.float32)

    @pl.when(f == nf - 1)
    def _finalize():
        o_ref[0] = acc_scr[...]


# -------------------------------- wrappers ----------------------------------

def fused_rms_qkv_rope(x, g1, wq_t, wk_t, wv_t, cos_t, sin_t,
                       num_heads, ts, tn, vmem_cap):
    B, S, D = x.shape
    Dh = D // num_heads
    ns, nn = S // ts, D // tn
    kern = functools.partial(_rms_qkv_rope_kernel,
                             head_dim=Dh, heads_per_tile=tn // Dh)
    out_spec = pl.BlockSpec((1, ts, tn), lambda b, s, n: (b, s, n))
    need = (ts * D * 4 * 2 + 3 * D * tn * 2 * 2 + 3 * ts * tn * 2 * 2
            + 2 * ts * tn * 4 * 2 + ts * D * 2 + D * 4 * 2)
    return pl.pallas_call(
        kern,
        out_shape=(jax.ShapeDtypeStruct((B, S, D), jnp.bfloat16),
                   jax.ShapeDtypeStruct((B, S, D), jnp.bfloat16),
                   jax.ShapeDtypeStruct((B, S, D), jnp.bfloat16)),
        grid=(B, ns, nn),
        in_specs=[
            pl.BlockSpec((1, ts, D), lambda b, s, n: (b, s, 0)),
            pl.BlockSpec((1, D), lambda b, s, n: (0, 0)),
            pl.BlockSpec((D, tn), lambda b, s, n: (0, n)),
            pl.BlockSpec((D, tn), lambda b, s, n: (0, n)),
            pl.BlockSpec((D, tn), lambda b, s, n: (0, n)),
            pl.BlockSpec((ts, tn), lambda b, s, n: (s, 0)),
            pl.BlockSpec((ts, tn), lambda b, s, n: (s, 0)),
        ],
        out_specs=(out_spec, out_spec, out_spec),
        scratch_shapes=[pltpu.VMEM((ts, D), jnp.bfloat16)],   # cached rmsnorm
        compiler_params=_compiler_params(("parallel", "parallel", "arbitrary"),
                                         need, vmem_cap),
    )(x, g1, wq_t, wk_t, wv_t, cos_t, sin_t)


def flash_attn_oproj_residual(q, k, v, wo_t, res, num_heads, tq, tk,
                              use_bf16_exp, vmem_cap, single_buffer_wo):
    B, S, D = q.shape
    Dh = D // num_heads
    nq, nk = S // tq, S // tk
    kern = functools.partial(_flash_oproj_kernel, num_heads=num_heads,
                             head_dim=Dh, tq=tq, tk=tk,
                             use_bf16_exp=use_bf16_exp)

    # Causal DMA elision: once a kv tile lies entirely above the diagonal its
    # block index stops advancing, so Pallas never re-fetches it from HBM.
    def kv_index(b, qi, ki):
        return (b, jnp.minimum(ki, (qi * tq + tq - 1) // tk), 0)

    wo_kwargs = {}
    if single_buffer_wo:
        # constant-index weight never re-fetched -> single buffer halves VMEM
        wo_kwargs["pipeline_mode"] = pl.Buffered(1)
    wo_spec = pl.BlockSpec((D, D), lambda b, qi, ki: (0, 0), **wo_kwargs)

    wo_bufs = 1 if single_buffer_wo else 2
    need = (D * D * 2 * wo_bufs + tq * D * 2 * 2 + 2 * tk * D * 2 * 2
            + 2 * tq * D * 4 * 2 + tq * D * 4
            + 2 * num_heads * tq * _STATE_LANES * 4)

    return pl.pallas_call(
        kern,
        out_shape=jax.ShapeDtypeStruct((B, S, D), jnp.float32),
        grid=(B, nq, nk),
        in_specs=[
            pl.BlockSpec((1, tq, D), lambda b, qi, ki: (b, qi, 0)),
            pl.BlockSpec((1, tk, D), kv_index),
            pl.BlockSpec((1, tk, D), kv_index),
            wo_spec,
            pl.BlockSpec((1, tq, D), lambda b, qi, ki: (b, qi, 0)),
        ],
        out_specs=pl.BlockSpec((1, tq, D), lambda b, qi, ki: (b, qi, 0)),
        scratch_shapes=[
            pltpu.VMEM((tq, D), jnp.float32),                        # acc
            pltpu.VMEM((num_heads, tq, _STATE_LANES), jnp.float32),  # m
            pltpu.VMEM((num_heads, tq, _STATE_LANES), jnp.float32),  # l
        ],
        compiler_params=_compiler_params(("parallel", "parallel", "arbitrary"),
                                         need, vmem_cap),
    )(q, k, v, wo_t, res)


def fused_rms_swiglu_residual(mid, g2, w1_t, w3_t, w2_t, ts, tf, vmem_cap):
    B, S, D = mid.shape
    F = w1_t.shape[1]
    ns, nf = S // ts, F // tf
    need = (2 * ts * D * 4 * 2 + 2 * D * tf * 2 * 2 + tf * D * 2 * 2
            + ts * D * 2 + ts * D * 4 + D * 4 * 2)
    return pl.pallas_call(
        _rms_swiglu_kernel,
        out_shape=jax.ShapeDtypeStruct((B, S, D), jnp.float32),
        grid=(B, ns, nf),
        in_specs=[
            pl.BlockSpec((1, ts, D), lambda b, s, f: (b, s, 0)),
            pl.BlockSpec((1, D), lambda b, s, f: (0, 0)),
            pl.BlockSpec((D, tf), lambda b, s, f: (0, f)),
            pl.BlockSpec((D, tf), lambda b, s, f: (0, f)),
            pl.BlockSpec((tf, D), lambda b, s, f: (f, 0)),
        ],
        out_specs=pl.BlockSpec((1, ts, D), lambda b, s, f: (b, s, 0)),
        scratch_shapes=[
            pltpu.VMEM((ts, D), jnp.bfloat16),   # cached rmsnorm(mid)
            pltpu.VMEM((ts, D), jnp.float32),    # residual + partial sums
        ],
        compiler_params=_compiler_params(("parallel", "parallel", "arbitrary"),
                                         need, vmem_cap),
    )(mid, g2, w1_t, w3_t, w2_t)


# --------------------------- parameter preparation --------------------------

def prepare_params(params, num_heads):
    """One-time weight prep: transpose, permute q/k output columns so each
    head's RoPE even/odd components form contiguous halves, fold 1/sqrt(Dh)
    into Wq, cast matmul weights to bf16."""
    D = params["wq"].shape[0]
    Dh = D // num_heads
    perm = np.concatenate(
        [np.concatenate([np.arange(h * Dh, (h + 1) * Dh, 2),
                         np.arange(h * Dh + 1, (h + 1) * Dh, 2)])
         for h in range(num_heads)])
    scale = 1.0 / math.sqrt(Dh)
    return {
        "ln1": params["ln1"].reshape(1, -1).astype(jnp.float32),
        "ln2": params["ln2"].reshape(1, -1).astype(jnp.float32),
        "wq_t": (params["wq"][perm] * scale).T.astype(jnp.bfloat16),  # (D, D)
        "wk_t": params["wk"][perm].T.astype(jnp.bfloat16),            # (D, D)
        "wv_t": params["wv"].T.astype(jnp.bfloat16),                  # (D, D)
        "wo_t": params["wo"].T.astype(jnp.bfloat16),                  # (D, D)
        "w1_t": params["w1"].T.astype(jnp.bfloat16),                  # (D, F)
        "w3_t": params["w3"].T.astype(jnp.bfloat16),                  # (D, F)
        "w2_t": params["w2"].T.astype(jnp.bfloat16),                  # (F, D)
    }


def transformer_block(x, prepped, num_heads, theta):
    B, S, D = x.shape
    Dh = D // num_heads
    half = Dh // 2
    F = prepped["w1_t"].shape[1]

    wide_mxu, use_bf16_exp, is_v7x, vmem_cap = _chip_traits()

    # Tile sizes (degenerate to full extent at the toy shapes).  Large
    # sequence tiles for the weight-streaming kernels (K1/K3) so HBM weight
    # traffic is amortized over many tokens; attention q tile fills the
    # 256-wide MXU on v6e/v7x, 128 on v5e.
    ts_qkv = min(S, 512)
    tn = min(D, max(Dh, (512 // Dh) * Dh))        # QKV output-column tile
    tq = min(S, 256 if wide_mxu else 128)
    tk = min(S, 128)
    ts_ffn = min(S, 512)
    tf = min(F, 128 if is_v7x else 256)
    assert Dh % 2 == 0
    assert S % ts_qkv == 0 and S % tq == 0 and S % tk == 0 and S % ts_ffn == 0
    assert D % tn == 0 and tn % Dh == 0 and F % tf == 0

    # RoPE tables in the permuted per-head [even-half | odd-half] layout,
    # replicated across the heads of one QKV column tile (identical pattern
    # for every tile).  The sin sign is folded in so the in-kernel rotation is
    # t * COS + swap_halves(t) * SIN with full-width lane-dense stores.
    pos = jnp.arange(S, dtype=jnp.float32)
    inv_freq = theta ** (-(2.0 * jnp.arange(half, dtype=jnp.float32)) / Dh)
    ang = pos[:, None] * inv_freq[None, :]
    cos, sin = jnp.cos(ang), jnp.sin(ang)                      # (S, Dh/2)
    heads_per_tile = tn // Dh
    cos_t = jnp.tile(jnp.concatenate([cos, cos], axis=1), (1, heads_per_tile))
    sin_t = jnp.tile(jnp.concatenate([-sin, sin], axis=1), (1, heads_per_tile))

    q, k, v = fused_rms_qkv_rope(x, prepped["ln1"], prepped["wq_t"],
                                 prepped["wk_t"], prepped["wv_t"],
                                 cos_t, sin_t, num_heads, ts_qkv, tn, vmem_cap)

    try:
        mid = flash_attn_oproj_residual(q, k, v, prepped["wo_t"], x, num_heads,
                                        tq, tk, use_bf16_exp, vmem_cap,
                                        single_buffer_wo=True)
    except Exception:
        # pl.Buffered(1) unsupported on this jax version: fall back to the
        # default double-buffering of the constant-index o_proj weight.
        mid = flash_attn_oproj_residual(q, k, v, prepped["wo_t"], x, num_heads,
                                        tq, tk, use_bf16_exp, vmem_cap,
                                        single_buffer_wo=False)

    out = fused_rms_swiglu_residual(mid, prepped["ln2"], prepped["w1_t"],
                                    prepped["w3_t"], prepped["w2_t"],
                                    ts_ffn, tf, vmem_cap)
    return out


# ---------------------------- pure-JAX reference ----------------------------

def _ref_rope(t, cos, sin):
    te, to = t[..., 0::2], t[..., 1::2]
    re = te * cos - to * sin
    ro = te * sin + to * cos
    return jnp.stack([re, ro], axis=-1).reshape(t.shape)


def ref_transformer_block(x, params, num_heads, theta):
    B, S, D = x.shape
    H, Dh = num_heads, D // num_heads

    def rms(t, g):
        return t * jax.lax.rsqrt(jnp.mean(t * t, -1, keepdims=True) + EPS) * g

    pos = jnp.arange(S, dtype=jnp.float32)
    inv_freq = theta ** (-(2.0 * jnp.arange(Dh // 2, dtype=jnp.float32)) / Dh)
    ang = pos[:, None] * inv_freq[None, :]
    cos, sin = jnp.cos(ang), jnp.sin(ang)

    h1 = rms(x, params["ln1"])
    q = (h1 @ params["wq"].T).reshape(B, S, H, Dh).transpose(0, 2, 1, 3)
    k = (h1 @ params["wk"].T).reshape(B, S, H, Dh).transpose(0, 2, 1, 3)
    v = (h1 @ params["wv"].T).reshape(B, S, H, Dh).transpose(0, 2, 1, 3)
    q, k = _ref_rope(q, cos, sin), _ref_rope(k, cos, sin)

    score = jnp.einsum("bhqd,bhkd->bhqk", q, k)
    mask = jnp.tril(jnp.ones((S, S), dtype=bool))
    score = jnp.where(mask, score, -jnp.inf) / math.sqrt(Dh)
    probs = jax.nn.softmax(score, axis=-1)
    attn = jnp.einsum("bhqk,bhkd->bhqd", probs, v)
    attn = attn.transpose(0, 2, 1, 3).reshape(B, S, D)
    mid = x + attn @ params["wo"].T

    h2 = rms(mid, params["ln2"])
    a = h2 @ params["w1"].T
    ff = ((a * jax.nn.sigmoid(a)) * (h2 @ params["w3"].T)) @ params["w2"].T
    return mid + ff


# ----------------------------------- main ------------------------------------

if __name__ == "__main__":
    # NOTE: toy shapes (S=8, D=32) are below the (8,128) lane tile; they only
    # validate semantics — perf conclusions require production D/S.
    B, S = 2, 8
    d_model, num_heads, d_ff = 32, 4, 64
    theta = 10000.0

    key = jax.random.PRNGKey(0)
    ks = jax.random.split(key, 10)
    scale = 0.05
    params = {
        "ln1": 1.0 + 0.1 * jax.random.normal(ks[0], (d_model,), jnp.float32),
        "ln2": 1.0 + 0.1 * jax.random.normal(ks[1], (d_model,), jnp.float32),
        "wq": scale * jax.random.normal(ks[2], (d_model, d_model), jnp.float32),
        "wk": scale * jax.random.normal(ks[3], (d_model, d_model), jnp.float32),
        "wv": scale * jax.random.normal(ks[4], (d_model, d_model), jnp.float32),
        "wo": scale * jax.random.normal(ks[5], (d_model, d_model), jnp.float32),
        "w1": scale * jax.random.normal(ks[6], (d_ff, d_model), jnp.float32),
        "w2": scale * jax.random.normal(ks[7], (d_model, d_ff), jnp.float32),
        "w3": scale * jax.random.normal(ks[8], (d_ff, d_model), jnp.float32),
    }
    x = jax.random.normal(ks[9], (B, S, d_model), jnp.float32)

    prepped = prepare_params(params, num_heads)           # one-time weight prep
    out = transformer_block(x, prepped, num_heads, theta)
    out = jax.block_until_ready(out)

    ref = ref_transformer_block(x, params, num_heads, theta)
    # bf16 matmul inputs (f32 accumulation), optional bf16 exp on v6e/v7x
    # -> loosened tolerance vs the f32 reference.
    np.testing.assert_allclose(np.asarray(out), np.asarray(ref),
                               rtol=2e-2, atol=2e-2)
    print("KERNEL_OK")
</pallas_src>

<mosaic_0001>
module attributes {stable_mosaic.version = 11 : i64} {
  func.func @_rms_qkv_rope_kernel(%arg0: i32, %arg1: i32, %arg2: i32, %arg3: memref<1x8x32xf32, #tpu.memory_space<vmem>>, %arg4: memref<1x32xf32, #tpu.memory_space<vmem>>, %arg5: memref<32x32xbf16, #tpu.memory_space<vmem>>, %arg6: memref<32x32xbf16, #tpu.memory_space<vmem>>, %arg7: memref<32x32xbf16, #tpu.memory_space<vmem>>, %arg8: memref<8x32xf32, #tpu.memory_space<vmem>>, %arg9: memref<8x32xf32, #tpu.memory_space<vmem>>, %arg10: memref<1x8x32xbf16, #tpu.memory_space<vmem>>, %arg11: memref<1x8x32xbf16, #tpu.memory_space<vmem>>, %arg12: memref<1x8x32xbf16, #tpu.memory_space<vmem>>, %arg13: memref<8x32xbf16, #tpu.memory_space<vmem>>) attributes {dimension_semantics = [#tpu.dimension_semantics<parallel>, #tpu.dimension_semantics<parallel>, #tpu.dimension_semantics<arbitrary>], iteration_bounds = array<i64: 2, 1, 1>, scalar_prefetch = 0 : i64, scratch_operands = 1 : i64, tpu.core_type = #tpu.core_type<tc>, window_params = [{transform_indices = @transform_0, window_bounds = array<i64: 1, 8, 32>}, {pipeline_mode = #tpu.pipeline_mode<synchronous>, transform_indices = @transform_1, window_bounds = array<i64: 1, 32>}, {transform_indices = @transform_2, window_bounds = array<i64: 32, 32>}, {transform_indices = @transform_3, window_bounds = array<i64: 32, 32>}, {transform_indices = @transform_4, window_bounds = array<i64: 32, 32>}, {transform_indices = @transform_5, window_bounds = array<i64: 8, 32>}, {transform_indices = @transform_6, window_bounds = array<i64: 8, 32>}, {transform_indices = @transform_7, window_bounds = array<i64: 1, 8, 32>}, {transform_indices = @transform_8, window_bounds = array<i64: 1, 8, 32>}, {transform_indices = @transform_9, window_bounds = array<i64: 1, 8, 32>}]} {
    %c0_i32 = arith.constant 0 : i32
    %0 = arith.cmpi eq, %arg2, %c0_i32 : i32
    %1 = arith.extui %0 : i1 to i32
    %c0_i32_0 = arith.constant 0 : i32
    %2 = arith.cmpi ne, %1, %c0_i32_0 : i32
    scf.if %2 {
      %c0_23 = arith.constant 0 : index
      %c0_24 = arith.constant 0 : index
      %c0_25 = arith.constant 0 : index
      %48 = vector.load %arg3[%c0_23, %c0_24, %c0_25] : memref<1x8x32xf32, #tpu.memory_space<vmem>>, vector<1x8x32xf32>
      %49 = vector.shape_cast %48 : vector<1x8x32xf32> to vector<8x32xf32>
      %50 = arith.mulf %49, %49 : vector<8x32xf32>
      %cst_26 = arith.constant dense<0.000000e+00> : vector<8xf32>
      %51 = vector.multi_reduction <add>, %50, %cst_26 [1] : vector<8x32xf32> to vector<8xf32>
      %52 = vector.shape_cast %51 : vector<8xf32> to vector<8x1xf32>
      %cst_27 = arith.constant 3.200000e+01 : f32
      %53 = vector.broadcast %cst_27 : f32 to vector<8x1xf32>
      %54 = arith.divf %52, %53 : vector<8x1xf32>
      %cst_28 = arith.constant 9.99999974E-6 : f32
      %55 = vector.broadcast %cst_28 : f32 to vector<8x1xf32>
      %56 = arith.addf %54, %55 : vector<8x1xf32>
      %57 = math.rsqrt %56 : vector<8x1xf32>
      %58 = vector.broadcast %57 : vector<8x1xf32> to vector<8x32xf32>
      %59 = arith.mulf %49, %58 : vector<8x32xf32>
      %c0_29 = arith.constant 0 : index
      %c0_30 = arith.constant 0 : index
      %60 = vector.load %arg4[%c0_29, %c0_30] : memref<1x32xf32, #tpu.memory_space<vmem>>, vector<1x32xf32>
      %61 = vector.broadcast %60 : vector<1x32xf32> to vector<8x32xf32>
      %62 = arith.mulf %59, %61 : vector<8x32xf32>
      %63 = arith.truncf %62 : vector<8x32xf32> to vector<8x32xbf16>
      %c0_31 = arith.constant 0 : index
      %c0_32 = arith.constant 0 : index
      %64 = vector.load %arg13[%c0_31, %c0_32] : memref<8x32xbf16, #tpu.memory_space<vmem>>, vector<8x32xbf16>
      tpu.vector_store %arg13[%c0_31, %c0_32], %63 {strides = array<i32>} : memref<8x32xbf16, #tpu.memory_space<vmem>>, vector<8x32xbf16>,
    } else {
    }
    %c0 = arith.constant 0 : index
    %c0_1 = arith.constant 0 : index
    %3 = vector.load %arg13[%c0, %c0_1] : memref<8x32xbf16, #tpu.memory_space<vmem>>, vector<8x32xbf16>
    %c0_2 = arith.constant 0 : index
    %c0_3 = arith.constant 0 : index
    %4 = vector.load %arg8[%c0_2, %c0_3] : memref<8x32xf32, #tpu.memory_space<vmem>>, vector<8x32xf32>
    %c0_4 = arith.constant 0 : index
    %c0_5 = arith.constant 0 : index
    %5 = vector.load %arg9[%c0_4, %c0_5] : memref<8x32xf32, #tpu.memory_space<vmem>>, vector<8x32xf32>
    %c0_6 = arith.constant 0 : index
    %c0_7 = arith.constant 0 : index
    %6 = vector.load %arg5[%c0_6, %c0_7] : memref<32x32xbf16, #tpu.memory_space<vmem>>, vector<32x32xbf16>
    %cst = arith.constant dense<0.000000e+00> : vector<8x32xf32>
    %7 = tpu.matmul %3, %6, %cst {dimension_numbers = #tpu.dot_dimension_numbers<[1], [0], [0], [1], [0, 0, 1, 1], [], []>} : vector<8x32xbf16>, vector<32x32xbf16>, vector<8x32xf32> -> vector<8x32xf32>
    %8 = vector.extract_strided_slice %7 {offsets = [0, 4], sizes = [8, 4], strides = [1, 1]} : vector<8x32xf32> to vector<8x4xf32>
    %9 = vector.extract_strided_slice %7 {offsets = [0, 0], sizes = [8, 4], strides = [1, 1]} : vector<8x32xf32> to vector<8x4xf32>
    %10 = vector.extract_strided_slice %7 {offsets = [0, 12], sizes = [8, 4], strides = [1, 1]} : vector<8x32xf32> to vector<8x4xf32>
    %11 = vector.extract_strided_slice %7 {offsets = [0, 8], sizes = [8, 4], strides = [1, 1]} : vector<8x32xf32> to vector<8x4xf32>
    %12 = vector.extract_strided_slice %7 {offsets = [0, 20], sizes = [8, 4], strides = [1, 1]} : vector<8x32xf32> to vector<8x4xf32>
    %13 = vector.extract_strided_slice %7 {offsets = [0, 16], sizes = [8, 4], strides = [1, 1]} : vector<8x32xf32> to vector<8x4xf32>
    %14 = vector.extract_strided_slice %7 {offsets = [0, 28], sizes = [8, 4], strides = [1, 1]} : vector<8x32xf32> to vector<8x4xf32>
    %15 = vector.extract_strided_slice %7 {offsets = [0, 24], sizes = [8, 4], strides = [1, 1]} : vector<8x32xf32> to vector<8x4xf32>
    %16 = tpu.concatenate %8, %9, %10, %11, %12, %13, %14, %15 in 1 : vector<8x4xf32>, vector<8x4xf32>, vector<8x4xf32>, vector<8x4xf32>, vector<8x4xf32>, vector<8x4xf32>, vector<8x4xf32>, vector<8x4xf32> -> vector<8x32xf32>
    %17 = arith.mulf %7, %4 : vector<8x32xf32>
    %18 = arith.mulf %16, %5 : vector<8x32xf32>
    %19 = arith.addf %17, %18 : vector<8x32xf32>
    %20 = arith.truncf %19 : vector<8x32xf32> to vector<8x32xbf16>
    %c0_8 = arith.constant 0 : index
    %c0_9 = arith.constant 0 : index
    %c0_10 = arith.constant 0 : index
    %21 = vector.load %arg10[%c0_8, %c0_9, %c0_10] : memref<1x8x32xbf16, #tpu.memory_space<vmem>>, vector<1x8x32xbf16>
    %22 = vector.shape_cast %21 : vector<1x8x32xbf16> to vector<8x32xbf16>
    %23 = vector.shape_cast %20 : vector<8x32xbf16> to vector<1x8x32xbf16>
    tpu.vector_store %arg10[%c0_8, %c0_9, %c0_10], %23 {strides = array<i32>} : memref<1x8x32xbf16, #tpu.memory_space<vmem>>, vector<1x8x32xbf16>,
    %c0_11 = arith.constant 0 : index
    %c0_12 = arith.constant 0 : index
    %24 = vector.load %arg6[%c0_11, %c0_12] : memref<32x32xbf16, #tpu.memory_space<vmem>>, vector<32x32xbf16>
    %cst_13 = arith.constant dense<0.000000e+00> : vector<8x32xf32>
    %25 = tpu.matmul %3, %24, %cst_13 {dimension_numbers = #tpu.dot_dimension_numbers<[1], [0], [0], [1], [0, 0, 1, 1], [], []>} : vector<8x32xbf16>, vector<32x32xbf16>, vector<8x32xf32> -> vector<8x32xf32>
    %26 = vector.extract_strided_slice %25 {offsets = [0, 4], sizes = [8, 4], strides = [1, 1]} : vector<8x32xf32> to vector<8x4xf32>
    %27 = vector.extract_strided_slice %25 {offsets = [0, 0], sizes = [8, 4], strides = [1, 1]} : vector<8x32xf32> to vector<8x4xf32>
    %28 = vector.extract_strided_slice %25 {offsets = [0, 12], sizes = [8, 4], strides = [1, 1]} : vector<8x32xf32> to vector<8x4xf32>
    %29 = vector.extract_strided_slice %25 {offsets = [0, 8], sizes = [8, 4], strides = [1, 1]} : vector<8x32xf32> to vector<8x4xf32>
    %30 = vector.extract_strided_slice %25 {offsets = [0, 20], sizes = [8, 4], strides = [1, 1]} : vector<8x32xf32> to vector<8x4xf32>
    %31 = vector.extract_strided_slice %25 {offsets = [0, 16], sizes = [8, 4], strides = [1, 1]} : vector<8x32xf32> to vector<8x4xf32>
    %32 = vector.extract_strided_slice %25 {offsets = [0, 28], sizes = [8, 4], strides = [1, 1]} : vector<8x32xf32> to vector<8x4xf32>
    %33 = vector.extract_strided_slice %25 {offsets = [0, 24], sizes = [8, 4], strides = [1, 1]} : vector<8x32xf32> to vector<8x4xf32>
    %34 = tpu.concatenate %26, %27, %28, %29, %30, %31, %32, %33 in 1 : vector<8x4xf32>, vector<8x4xf32>, vector<8x4xf32>, vector<8x4xf32>, vector<8x4xf32>, vector<8x4xf32>, vector<8x4xf32>, vector<8x4xf32> -> vector<8x32xf32>
    %35 = arith.mulf %25, %4 : vector<8x32xf32>
    %36 = arith.mulf %34, %5 : vector<8x32xf32>
    %37 = arith.addf %35, %36 : vector<8x32xf32>
    %38 = arith.truncf %37 : vector<8x32xf32> to vector<8x32xbf16>
    %c0_14 = arith.constant 0 : index
    %c0_15 = arith.constant 0 : index
    %c0_16 = arith.constant 0 : index
    %39 = vector.load %arg11[%c0_14, %c0_15, %c0_16] : memref<1x8x32xbf16, #tpu.memory_space<vmem>>, vector<1x8x32xbf16>
    %40 = vector.shape_cast %39 : vector<1x8x32xbf16> to vector<8x32xbf16>
    %41 = vector.shape_cast %38 : vector<8x32xbf16> to vector<1x8x32xbf16>
    tpu.vector_store %arg11[%c0_14, %c0_15, %c0_16], %41 {strides = array<i32>} : memref<1x8x32xbf16, #tpu.memory_space<vmem>>, vector<1x8x32xbf16>,
    %c0_17 = arith.constant 0 : index
    %c0_18 = arith.constant 0 : index
    %42 = vector.load %arg7[%c0_17, %c0_18] : memref<32x32xbf16, #tpu.memory_space<vmem>>, vector<32x32xbf16>
    %cst_19 = arith.constant dense<0.000000e+00> : vector<8x32xf32>
    %43 = tpu.matmul %3, %42, %cst_19 {dimension_numbers = #tpu.dot_dimension_numbers<[1], [0], [0], [1], [0, 0, 1, 1], [], []>} : vector<8x32xbf16>, vector<32x32xbf16>, vector<8x32xf32> -> vector<8x32xf32>
    %44 = arith.truncf %43 : vector<8x32xf32> to vector<8x32xbf16>
    %c0_20 = arith.constant 0 : index
    %c0_21 = arith.constant 0 : index
    %c0_22 = arith.constant 0 : index
    %45 = vector.load %arg12[%c0_20, %c0_21, %c0_22] : memref<1x8x32xbf16, #tpu.memory_space<vmem>>, vector<1x8x32xbf16>
    %46 = vector.shape_cast %45 : vector<1x8x32xbf16> to vector<8x32xbf16>
    %47 = vector.shape_cast %44 : vector<8x32xbf16> to vector<1x8x32xbf16>
    tpu.vector_store %arg12[%c0_20, %c0_21, %c0_22], %47 {strides = array<i32>} : memref<1x8x32xbf16, #tpu.memory_space<vmem>>, vector<1x8x32xbf16>,
    return
  }
  func.func @transform_0(%arg0: i32, %arg1: i32, %arg2: i32) -> (i32, i32, i32) {
    %c0_i32 = arith.constant 0 : i32
    %c0_i32_0 = arith.constant 0 : i32
    return %arg0, %arg1, %c0_i32 : i32, i32, i32
  }
  func.func @transform_1(%arg0: i32, %arg1: i32, %arg2: i32) -> (i32, i32) {
    %c0_i32 = arith.constant 0 : i32
    %c0_i32_0 = arith.constant 0 : i32
    %c0_i32_1 = arith.constant 0 : i32
    return %c0_i32, %c0_i32_0 : i32, i32
  }
  func.func @transform_2(%arg0: i32, %arg1: i32, %arg2: i32) -> (i32, i32) {
    %c0_i32 = arith.constant 0 : i32
    %c0_i32_0 = arith.constant 0 : i32
    return %c0_i32, %arg2 : i32, i32
  }
  func.func @transform_3(%arg0: i32, %arg1: i32, %arg2: i32) -> (i32, i32) {
    %c0_i32 = arith.constant 0 : i32
    %c0_i32_0 = arith.constant 0 : i32
    return %c0_i32, %arg2 : i32, i32
  }
  func.func @transform_4(%arg0: i32, %arg1: i32, %arg2: i32) -> (i32, i32) {
    %c0_i32 = arith.constant 0 : i32
    %c0_i32_0 = arith.constant 0 : i32
    return %c0_i32, %arg2 : i32, i32
  }
  func.func @transform_5(%arg0: i32, %arg1: i32, %arg2: i32) -> (i32, i32) {
    %c0_i32 = arith.constant 0 : i32
    %c0_i32_0 = arith.constant 0 : i32
    return %arg1, %c0_i32 : i32, i32
  }
  func.func @transform_6(%arg0: i32, %arg1: i32, %arg2: i32) -> (i32, i32) {
    %c0_i32 = arith.constant 0 : i32
    %c0_i32_0 = arith.constant 0 : i32
    return %arg1, %c0_i32 : i32, i32
  }
  func.func @transform_7(%arg0: i32, %arg1: i32, %arg2: i32) -> (i32, i32, i32) {
    %c0_i32 = arith.constant 0 : i32
    return %arg0, %arg1, %arg2 : i32, i32, i32
  }
  func.func @transform_8(%arg0: i32, %arg1: i32, %arg2: i32) -> (i32, i32, i32) {
    %c0_i32 = arith.constant 0 : i32
    return %arg0, %arg1, %arg2 : i32, i32, i32
  }
  func.func @transform_9(%arg0: i32, %arg1: i32, %arg2: i32) -> (i32, i32, i32) {
    %c0_i32 = arith.constant 0 : i32
    return %arg0, %arg1, %arg2 : i32, i32, i32
  }
}

</mosaic_0001>

<bundles_post_ra>
// kernel: tpu_custom_call.1
= control target key start
LH: loop header
LB: loop body
LE: loop exit
PB: predicated region body
PF: predicated region fallthrough
CT: control target
= control target key end

     0   :  { %s1899_s0 = inlined_call_operand.hbm [shape: f32[2,8,32], index: 0, kind: input, shape index: {}]   ;;  %s1900_s1 = inlined_call_operand.hbm [shape: f32[1,32], index: 1, kind: input, shape index: {}]   ;;  %s1901_s2 = inlined_call_operand.hbm [shape: bf16[32,32], index: 2, kind: input, shape index: {}]   ;;  %s1902_s3 = inlined_call_operand.hbm [shape: bf16[32,32], index: 3, kind: input, shape index: {}]   ;;  %s1903_s4 = inlined_call_operand.hbm [shape: bf16[32,32], index: 4, kind: input, shape index: {}]   ;;  %s1904_s5 = inlined_call_operand.hbm [shape: f32[8,32], index: 5, kind: input, shape index: {}]   ;;  %s1905_s6 = inlined_call_operand.hbm [shape: f32[8,32], index: 6, kind: input, shape index: {}]   ;;  %s1906_s7 = inlined_call_operand.hbm [shape: bf16[2,8,32], index: 7, kind: output, shape index: {0}]   ;;  %s1907_s8 = inlined_call_operand.hbm [shape: bf16[2,8,32], index: 8, kind: output, shape index: {1}]   ;;  %s1908_s9 = inlined_call_operand.hbm [shape: bf16[2,8,32], index: 9, kind: output, shape index: {2}]  }
   0x1   :  { %1913 = sst [smem:[#allocation27_spill]] %s1899_s0 }
   0x2   :  { %1914 = sst [smem:[#allocation28_spill]] %s1900_s1 }
   0x3   :  { %1915 = sst [smem:[#allocation29_spill]] %s1901_s2 }
   0x4   :  { %1916 = sst [smem:[#allocation30_spill]] %s1902_s3 }
   0x5   :  { %1917 = sst [smem:[#allocation31_spill]] %s1903_s4 }
   0x6   :  { %15 = vsyncpa [#allocation4], 0 }
   0x7   :  { %17 = vsyncpa [#allocation4 + $0x1], 0 }
   0x8   :  { %18 = vsyncpa [#allocation7], 0 }
   0x9   :  { %19 = vsyncpa [#allocation10], 0 }
   0xa   :  { %20 = vsyncpa [#allocation13], 0 }
   0xb   :  { %21 = vsyncpa [#allocation5], 0 }
   0xc   :  { %23 = vsyncpa [#allocation5 + $0x1], 0 }
   0xd   :  { %24 = vsyncpa [#allocation17], 0 }
   0xe   :  { %26 = vsyncpa [#allocation17 + $0x1], 0  ;;  %s1623_s30 = smov 0   ;;  %s1625_s10 = smov 0  }
   0xf   :  { %s1627_s11 = smov 0   ;;  %s1629_s12 = smov 0  }
  0x10   :  { %s1631_s13 = smov 0   ;;  %s1633_s14 = smov 0  }
  0x11 LB: > { %s1654_s15 = sadd.s32 4294967295, %s1560_s14   ;;  %p991_p0 = scmp.ge.s32.totalorder %s1560_s14, 1  ;;  %s1560_s14 = sphi %s1633_s14, %s32_s14   ;;  %s1556_s13 = sphi %s1631_s13, %s1940_s13   ;;  %s1552_s12 = sphi %s1629_s12, %s1939_s12   ;;  %s1548_s11 = sphi %s1627_s11, %s1938_s11   ;;  %s1544_s10 = sphi %s1625_s10, %s1937_s10   ;;  %s1540_s30 = sphi %s1623_s30, %s1936_s30  }
  0x12   : > { %p74_p1 = scmp.eq.s32.totalorder %s1654_s15, 0  ;;  %p325_p2 = scmp.lt.s32.totalorder %s1560_s14, 3 }
  0x13   : > { %s1918_s1 = sld [smem:[#allocation28_spill]]  ;;  %p998_p4 = scmp.ge.s32.totalorder %s1560_s14, 2 }
  0x14   : > { %p1662_p3 = pnand %p991_p0, %p325_p2  ;;  %s1562_s20 = smov [#allocation6]  }
  0x15   : > { %s339_s21 = sshll.u32 %s1562_s20, 4  ;;  %s1921_s3 = sld [smem:[#allocation30_spill]]  ;;  %s340_s21 = int_to_ptr.vmem [resolvable:$true] %s339_s21 }
  0x16   : > { %p1085_p5 = pneg %p1662_p3  ;;  %s1563_s26 = smov [#allocation9]  }
  0x17   : > { %s368_s27 = sshll.u32 %s1563_s26, 4  ;;  %s399_s16 = sshll.u32 %s1904_s5, 4  ;;  %s369_s27 = int_to_ptr.vmem [resolvable:$true] %s368_s27  ;;  %s400_s16 = int_to_ptr.hbm [resolvable:$true] %s399_s16 }
  0x18   : > { %p1671_p6 = pnand %p1085_p5, %p74_p1  ;;  %s1564_s17 = smov 64  }
  0x19   : > { %s337_s18 = sshll.u32 %s1918_s1, 4  ;;  %s1565_s20 = smov 4   ;;  %s338_s18 = int_to_ptr.hbm [resolvable:$true] %s337_s18 }
  0x1a   : > { %1088 = dma.hbm_to_vmem [thread:$0]  (!%p1671_p6), %s338_s18, 16, %s340_s21, [#allocation7]  }
  0x1b   : > { %s366_s25 = sshll.u32 %s1921_s3, 4  ;;  %s1922_s2 = sld [smem:[#allocation29_spill]]  ;;  %s367_s25 = int_to_ptr.hbm [resolvable:$true] %s366_s25 }
  0x1c   : > { %1094 = dma.hbm_to_vmem [thread:$0]  (!%p1671_p6), %s367_s25, 256, %s369_s27, [#allocation10], %s1564_s17, %s1564_s17, %s1565_s20  }
  0x1d   : > { %s1566_s3 = smov [#allocation12]   ;;  %s1567_s21 = smov [#allocation8]  }
  0x1e   : > { %s401_s18 = sshll.u32 %s1566_s3, 4  ;;  %s352_s26 = sshll.u32 %s1567_s21, 4  ;;  %s402_s18 = int_to_ptr.vmem [resolvable:$true] %s401_s18  ;;  %s353_s26 = int_to_ptr.vmem [resolvable:$true] %s352_s26 }
  0x1f   : > { %1100 = dma.hbm_to_vmem [thread:$0]  (!%p1671_p6), %s400_s16, 128, %s402_s18, [#allocation13]  }
  0x20   : > { %s1923_s4 = sld [smem:[#allocation31_spill]]  ;;  %s413_s16 = sshll.u32 %s1905_s6, 4  ;;  %s414_s16 = int_to_ptr.hbm [resolvable:$true] %s413_s16 }
  0x21   : > { %s350_s1 = sshll.u32 %s1922_s2, 4  ;;  %s1568_s23 = smov [#allocation11]   ;;  %s351_s1 = int_to_ptr.hbm [resolvable:$true] %s350_s1 }
  0x22   : > { %1091 = dma.hbm_to_vmem [thread:$0]  (!%p1671_p6), %s351_s1, 256, %s353_s26, [#allocation7], %s1564_s17, %s1564_s17, %s1565_s20  }
  0x23   : > { %s384_s24 = sshll.u32 %s1568_s23, 4  ;;  %s1569_s18 = smov [#allocation14]   ;;  %s385_s24 = int_to_ptr.vmem [resolvable:$true] %s384_s24 }
  0x24   : > { %s415_s21 = sshll.u32 %s1569_s18, 4  ;;  %s51_s1 = sadd.s32 1, %s1556_s13  ;;  %s416_s21 = int_to_ptr.vmem [resolvable:$true] %s415_s21 }
  0x25   : > { %1103 = dma.hbm_to_vmem [thread:$0]  (!%p1671_p6), %s414_s16, 128, %s416_s21, [#allocation13]  }
  0x26   : > { %s382_s25 = sshll.u32 %s1923_s4, 4  ;;  %s1909_s26 = sadd.s32 4294967294, %s1560_s14   ;;  %s383_s25 = int_to_ptr.hbm [resolvable:$true] %s382_s25 }
  0x27   : > { %1097 = dma.hbm_to_vmem [thread:$0]  (!%p1671_p6), %s383_s25, 256, %s385_s24, [#allocation10], %s1564_s17, %s1564_s17, %s1565_s20  }
  0x28   : > { %p53_p7 = scmp.ge.s32.totalorder %s51_s1, 2  ;;  %s60_s28 = sadd.s32 1, %s1548_s11 }
  0x29   : > { %p67_p8 = scmp.ne.s32.totalorder %s1548_s11, %s1544_s10  ;;  %p68_p9 = scmp.eq.s32.totalorder %s1560_s14, 0 }
  0x2a   : > { %s1942_s1 = smov (%p53_p7, %s51_s1), 0  ;;  %p73_p10 = scmp.ne.s32.totalorder %s1544_s10, %s1540_s30 }
  0x2b   : > { %s55_s17 = ssub.s32 %s1556_s13, %s1942_s1  ;;  %p252_p11 = scmp.eq.s32.totalorder %s1654_s15, 1 }
  0x2c   : > { %p58_p12 = scmp.eq.s32.totalorder %s55_s17, 0  ;;  %p1717_p13 = por %p74_p1, %p73_p10 }
  0x2d   : > { %p1721_p0 = por %p252_p11, %p67_p8  ;;  %p258_p2 = scmp.eq.s32.totalorder %s1909_s26, 1 }
  0x2e   : > { %s1728_s29 = scalar_select %p58_p12, %s1548_s11, %s60_s28  }
  0x2f   : > { %p69_p5 = por %p68_p9, %p67_p8  ;;  %p1730_p6 = por %p258_p2, %p73_p10 }
  0x30   : > { %s426_s3 = sand.u32 1, %s1548_s11   ;;  %s1000_s27 = sshll.u32 %s1556_s13, 3 }
  0x31   : > { %p1124_p7 = scmp.lt.s32.totalorder %s1560_s14, 2  ;;  %s999_s16 = sshll.u32 %s426_s3, 3 }
  0x32   : > { %s1927_s0 = sld [smem:[#allocation27_spill]]  ;;  %s430_s17 = scalar_lea.vmem [#allocation3], %s999_s16 }
  0x33   : > { %s439_s2 = sshll.u32 %s430_s17, 4  ;;  %p1105_p11 = pnand %p1124_p7, %p69_p5  ;;  %s440_s2 = int_to_ptr.vmem [resolvable:$true] %s439_s2 }
  0x34   : > { %s427_s28 = scalar_lea.sflag [#allocation4], %s426_s3 }
  0x36   : > { %448 = sbr.rel (%p1662_p3) target bundleno = 516 (0x204), region = 48 }
  0x38   : > { %s435_s18 = scalar_lea.hbm %s1927_s0, %s1000_s27 }
  0x39   : > { %s437_s21 = sshll.u32 %s435_s18, 4  ;;  %s438_s21 = int_to_ptr.hbm [resolvable:$true] %s437_s21 }
  0x3a   : > { %1107 = dma.hbm_to_vmem [thread:$0]  (!%p1105_p11), %s438_s21, 128, %s440_s2, %s427_s28  }
  0x3b   : > { %s1743_s26 = sand.u32 1, %s1544_s10  }
  0x3c   : > { %s1002_s4 = sshll.u32 %s1743_s26, 3  ;;  %s451_s23 = scalar_lea.sflag [#allocation4], %s1743_s26 }
  0x3d   : > { %s454_s27 = scalar_lea.vmem [#allocation3], %s1002_s4 }
  0x3e   : > { %1515 = dma.done.wait (%p1717_p13), %s451_s23, 128  }
  0x3f   : > { %1517 = vsyncadd (%p1717_p13), %s451_s23, 4294967168 }
  0x40   : > { %1519 = dma.done.wait (%p74_p1), [#allocation7], 272  }
  0x41   : > { %1521 = vsyncadd (%p74_p1), [#allocation7], 4294967024 }
  0x42   : > { %1523 = dma.done.wait (%p74_p1), [#allocation10], 512  }
  0x43   : > { %1525 = vsyncadd (%p74_p1), [#allocation10], 4294966784 }
  0x44   : > { %1527 = dma.done.wait (%p74_p1), [#allocation13], 256  }
  0x45   : > { %1529 = vsyncadd (%p74_p1), [#allocation13], 4294967040  ;;  %v535_v0 = vld [vmem:[%s454_s27] sm:$0xff]  ;;  %vm537_vm0 = vcmask 261120   ;;  %v1570_v3 = vmov 32.0   ;;  %v1047_v13 = vld [vmem:[#allocation8] sm:$0xff] }
  0x46   : > { %v536_v1 = vmul.f32 %v535_v0, %v535_v0  ;;  %1192 = vrcp.f32 %v1570_v3  ;;  %v1048_v9 = vld [vmem:[#allocation8 + $0x8] sm:$0xff]  ;;  %v1050_v10 = vld [vmem:[#allocation9 + $0x8] sm:$0xff]  ;;  %v1049_v14 = vld [vmem:[#allocation9] sm:$0xff]  ;;  %vm567_vm5 = vcmask 257024   ;;  %s1571_s2 = smov 4   ;;  %s1572_s4 = smov 124  }
  0x47   : > { %v1052_v11 = vld [vmem:[#allocation11 + $0x8] sm:$0xff]  ;;  %598 = vmatpush.bf16.msra.mxu0 %v1048_v9  ;;  %654 = vmatpush.bf16.msra.mxu1 %v1050_v10  ;;  %v1051_v15 = vld [vmem:[#allocation11] sm:$0xff]  ;;  %v1191_v25 = vld [vmem:[#allocation6] ss:$0 sm:$0xff]  ;;  %s1772_s19 = sshll.u32 %s1743_s26, 2  ;;  %vm612_vm6 = vcmask 31744  }
  0x48   : > { %v538_v2 = vsel %vm537_vm0, %v536_v1, 0.0  ;;  %702 = vmatpush.bf16.msra.mxu2 %v1052_v11  ;;  %s529_s22 = scalar_lea.vmem [#allocation18], %s1772_s19  ;;  %vm614_vm7 = vcmask 64512   ;;  %vm616_vm8 = vcmask 97280   ;;  %vm618_vm9 = vcmask 130048   ;;  %s1783_s3 = sshll.u32 %s1552_s12, 2 }
  0x49   : > { %539 = vadd.xlane.f32.xlu0 %v538_v2  ;;  %vm620_vm10 = vcmask 162816   ;;  %vm622_vm11 = vcmask 195584   ;;  %vm624_vm12 = vcmask 228352   ;;  %v570_v44 = vld [vmem:[#allocation12] sm:$0xff]  ;;  %v571_v45 = vld [vmem:[#allocation14] sm:$0xff]  ;;  %s750_s18 = scalar_lea.hbm %s1907_s8, %s1783_s3  ;;  %s766_s17 = scalar_lea.hbm %s1908_s9, %s1783_s3 }
  0x4a   : > { %s716_s28 = sand.u32 1, %s1654_s15   ;;  %s522_s23 = scalar_lea.vmem [#allocation16], %s1772_s19 }
  0x4b   : > { %599 = vmatpush.bf16.msra.mxu0 %v1047_v13  ;;  %655 = vmatpush.bf16.msra.mxu1 %v1049_v14  ;;  %s1800_s27 = sshll.u32 %s522_s23, 4  ;;  %s1809_s16 = sshll.u32 %s766_s17, 4  ;;  %s753_s27 = int_to_ptr.vmem [resolvable:$true] %s1800_s27 }
  0x4c   : > { %v1193_v4 = vpop.eup %1192  ;;  %703 = vmatpush.bf16.msra.mxu2 %v1051_v15  ;;  %1929 = sst [smem:[#allocation26_spill]] %s1809_s16  ;;  %s734_s24 = scalar_lea.hbm %s1906_s7, %s1783_s3 }
  0x4d   : > { %v542_v5 = vmul.f32 32.0, %v1193_v4  ;;  %vm546_vm1 = vweird.f32 %v1193_v4  ;;  %s1426_s16 = scalar_lea.hbm %s1907_s8, 8 }
  0x4f   : > { %v543_v6 = vsub.f32 1.0, %v542_v5 }
  0x51   : > { %v544_v7 = vmul.f32 %v1193_v4, %v543_v6 }
  0x53   : > { %v545_v8 = vadd.f32 %v1193_v4, %v544_v7 }
  0x55   : > { %v547_v12 = vsel %vm546_vm1, %v1193_v4, %v545_v8 }
  0xbc   : > { %v540_v16 = vpop.xlane.xlu0 %539 }
  0xbd   : > { %v548_v17 = vmul.f32 %v547_v12, %v540_v16 }
  0xbf   : > { %v549_v18 = vadd.f32 1e-05, %v548_v17 }
  0xc1   : > { %1194 = vrsqrt.f32 %v549_v18  ;;  %vm556_vm3 = vweird.f32 %v549_v18 }
  0xc7   : > { %v1195_v19 = vpop.eup %1194 }
  0xc8   : > { %v551_v20 = vmul.f32 %v1195_v19, %v549_v18  ;;  %vm557_vm2 = vweird.f32 %v1195_v19 }
  0xc9   : > { %vm558_vm4 = vmor %vm556_vm3, %vm557_vm2 }
  0xca   : > { %v552_v21 = vmul.f32 %v1195_v19, %v551_v20 }
  0xcc   : > { %v553_v22 = vmul.f32 0.5, %v552_v21 }
  0xce   : > { %v554_v23 = vsub.f32 1.5, %v553_v22 }
  0xd0   : > { %v555_v24 = vmul.f32 %v1195_v19, %v554_v23 }
  0xd2   : > { %v559_v26 = vsel %vm558_vm4, %v1195_v19, %v555_v24 }
  0xd3   : > { %v560_v27 = vmul.f32 %v559_v26, %v535_v0 }
  0xd5   : > { %v565_v28 = vmul.f32 %v1191_v25, %v560_v27 }
  0xd7   : > { %v566_v29 = vpack.c.bf16 %v565_v28, %v565_v28 }
  0xd9   : > { %568 = vst.msk [vmem:[#allocation2] sm:$0xf] %vm567_vm5, %v566_v29 }
  0xe0   : > { %v569_v30 = vld [vmem:[#allocation2] sm:$0xf] }
  0xe1   : > { %1020 = vmatmul.msk.bf16.vlgmr.msra.gmra.mxu0 %vm537_vm0, %v569_v30  ;;  %1029 = vmatmul.msk.bf16.vlgmr.msra.gmra.mxu1 %vm537_vm0, %v569_v30 }
  0xe2   : > { %1038 = vmatmul.msk.bf16.vlgmr.msra.gmra.mxu2 %vm537_vm0, %v569_v30 }
 0x15e   : > { %v1768_v31 = vpop.f32.mrf.mxu0  ;;  %v657_v32 = vpop.f32.mrf.mxu1 }
 0x15f   : > { %665 = vrot.lane.b32.xlu1 %v657_v32, %s1571_s2  ;;  %662 = vrot.lane.b32.xlu0 %v657_v32, %s1572_s4  ;;  %v675_v49 = vmul.f32 %v657_v32, %v570_v44 }
 0x160   : > { %609 = vrot.lane.b32.xlu2 %v1768_v31, %s1571_s2  ;;  %s1802_s2 = sshll.u32 %s750_s18, 4  ;;  %s1825_s18 = scalar_lea.sflag [#allocation17], %s716_s28  ;;  %s755_s2 = int_to_ptr.hbm [resolvable:$true] %s1802_s2 }
 0x161   : > { %s1420_s12 = sshra.s32 %s755_s2, 4  ;;  %s1421_s12 = int_to_ptr.hbm [resolvable:$true] %s1420_s12 }
 0x162   : > { %s1422_s21 = scalar_lea.hbm %s1421_s12, 4  ;;  %p1427_p9 = scmp.lt.s32.totalorder %s1421_s12, %s1907_s8 }
 0x163   : > { %p1423_p1 = scmp.ne.s32.totalorder %s1421_s12, %s1422_s21  ;;  %p1428_p10 = scmp.lt.s32.totalorder %s1426_s16, %s1422_s21 }
 0x165   : > { %v705_v33 = vpop.f32.mrf.mxu2  ;;  %p1424_p3 = pnand %p1423_p1, %p1721_p0  ;;  %p1429_p12 = por %p1428_p10, %p1427_p9 }
 0x166   : > { %v709_v34 = vpack.c.bf16 %v705_v33, %v705_v33  ;;  %v603_v35 = vpop.f32.mrf.mxu0  ;;  %v659_v36 = vpop.f32.mrf.mxu1 }
 0x167   : > { %606 = vrot.lane.b32.xlu1 %v1768_v31, %s1572_s4  ;;  %s1807_s4 = sshll.u32 %s529_s22, 4  ;;  %p1425_p8 = pneg %p1424_p3 }
 0x168   : > { %710 = vst.msk [vmem:[%s529_s22] sm:$0xf] %vm567_vm5, %v709_v34  ;;  %1928 = sst [smem:[#allocation25_spill]] %s1807_s4 }
 0x169   : > { %p1430_p13 = pnand %p1429_p12, %p1425_p8 }
 0x16d   : > { %v707_v37 = vpop.f32.mrf.mxu2 }
 0x1ba   : > { %v610_v50 = vpop.permute.xlu2 %609 }
 0x1d1   : > { %v666_v38 = vpop.permute.xlu1 %665  ;;  %v663_v39 = vpop.permute.xlu0 %662 }
 0x1d2   : > { %v668_v40 = vsel %vm612_vm6, %v663_v39, %v666_v38 }
 0x1d3   : > { %v669_v41 = vsel %vm614_vm7, %v668_v40, %v663_v39 }
 0x1d4   : > { %v670_v42 = vsel %vm616_vm8, %v669_v41, %v666_v38 }
 0x1d5   : > { %v671_v43 = vsel %vm618_vm9, %v670_v42, %v663_v39 }
 0x1d6   : > { %v672_v46 = vsel %vm620_vm10, %v671_v43, %v666_v38 }
 0x1d7   : > { %v673_v47 = vsel %vm622_vm11, %v672_v46, %v663_v39 }
 0x1d8   : > { %v674_v48 = vsel %vm624_vm12, %v673_v47, %v666_v38 }
 0x1d9   : > { %v676_v51 = vmul.f32 %v674_v48, %v571_v45  ;;  %v607_v52 = vpop.permute.xlu1 %606 }
 0x1da   : > { %v613_v53 = vsel %vm612_vm6, %v607_v52, %v610_v50 }
 0x1db   : > { %v677_v54 = vadd.f32 %v676_v51, %v675_v49  ;;  %v615_v55 = vsel %vm614_vm7, %v613_v53, %v607_v52 }
 0x1dc   : > { %v617_v56 = vsel %vm616_vm8, %v615_v55, %v610_v50 }
 0x1dd   : > { %v678_v57 = vpack.c.bf16 %v677_v54, %v677_v54  ;;  %v619_v58 = vsel %vm618_vm9, %v617_v56, %v607_v52 }
 0x1de   : > { %v621_v59 = vsel %vm620_vm10, %v619_v58, %v610_v50 }
 0x1df   : > { %v623_v60 = vsel %vm622_vm11, %v621_v59, %v607_v52  ;;  %679 = vst.msk [vmem:[%s522_s23] sm:$0xf] %vm567_vm5, %v678_v57 }
 0x1e0   : > { %v625_v61 = vsel %vm624_vm12, %v623_v60, %v610_v50 }
 0x1e1   : > { %1433 = shalt.err (!%p1430_p13)
}
 0x1e2   : > { %s1930_s28 = sld [smem:[#allocation26_spill]]  ;;  %v626_v62 = vmul.f32 %v1768_v31, %v570_v44  ;;  %v627_v63 = vmul.f32 %v625_v61, %v571_v45  ;;  %s1454_s12 = scalar_lea.hbm %s1908_s9, 8 }
 0x1e3   : > { %1080 = dma.vmem_to_hbm [thread:$0]  (%p1721_p0), %s753_s27, 64, %s755_s2, %s1825_s18  }
 0x1e8   : > { %s1931_s15 = int_to_ptr.hbm [resolvable:$true] %s1930_s28 }
 0x1e9   : > { %s1448_s4 = sshra.s32 %s1931_s15, 4  ;;  %s1449_s4 = int_to_ptr.hbm [resolvable:$true] %s1448_s4 }
 0x1ea   : > { %s1450_s22 = scalar_lea.hbm %s1449_s4, 4  ;;  %p1455_p11 = scmp.lt.s32.totalorder %s1449_s4, %s1908_s9 }
 0x1eb   : > { %p1451_p2 = scmp.ne.s32.totalorder %s1449_s4, %s1450_s22  ;;  %p1456_p1 = scmp.lt.s32.totalorder %s1454_s12, %s1450_s22 }
 0x1ed   : > { %p1452_p5 = pnand %p1451_p2, %p1721_p0  ;;  %p1457_p3 = por %p1456_p1, %p1455_p11 }
 0x1ef   : > { %p1453_p7 = pneg %p1452_p5 }
 0x1f1   : > { %p1458_p8 = pnand %p1457_p3, %p1453_p7 }
 0x1f3   : > { %1461 = shalt.err (!%p1458_p8)
}
 0x1f4   : > { %s1932_s27 = smov %s1931_s15  ;;  %s1933_s2 = sld [smem:[#allocation25_spill]]  ;;  %v628_v0 = vadd.f32 %v627_v63, %v626_v62 }
 0x1f5   : > { %s515_s15 = scalar_lea.vmem [#allocation15], %s1772_s19  ;;  %s738_s22 = sshll.u32 %s734_s24, 4  ;;  %s739_s22 = int_to_ptr.hbm [resolvable:$true] %s738_s22 }
 0x1f6   : > { %s736_s0 = sshll.u32 %s515_s15, 4  ;;  %v629_v1 = vpack.c.bf16 %v628_v0, %v628_v0  ;;  %s712_s28 = scalar_lea.sflag [#allocation5], %s1743_s26  ;;  %s737_s0 = int_to_ptr.vmem [resolvable:$true] %s736_s0 }
 0x1f7   : > { %s1476_s12 = sshra.s32 %s739_s22, 4  ;;  %s1482_s17 = scalar_lea.hbm %s1906_s7, 8  ;;  %s1477_s12 = int_to_ptr.hbm [resolvable:$true] %s1476_s12 }
 0x1f8   : > { %631 = vst.msk [vmem:[%s515_s15] sm:$0xf] %vm567_vm5, %v629_v1  ;;  %s1478_s21 = scalar_lea.hbm %s1477_s12, 4  ;;  %p1483_p13 = scmp.lt.s32.totalorder %s1477_s12, %s1906_s7 }
 0x1f9   : > { %p1479_p9 = scmp.ne.s32.totalorder %s1477_s12, %s1478_s21  ;;  %p1484_p2 = scmp.lt.s32.totalorder %s1482_s17, %s1478_s21 }
 0x1fa   : > { %s1934_s23 = int_to_ptr.vmem [resolvable:$true] %s1933_s2 }
 0x1fb   : > { %1081 = dma.vmem_to_hbm [thread:$0]  (%p1721_p0), %s1934_s23, 64, %s1932_s27, %s1825_s18  }
 0x1fc   : > { %p1480_p10 = pnand %p1479_p9, %p1721_p0  ;;  %p1485_p5 = por %p1484_p2, %p1483_p13 }
 0x1fe   : > { %p1481_p12 = pneg %p1480_p10 }
 0x200   : > { %p1486_p7 = pnand %p1485_p5, %p1481_p12 }
 0x202   : > { %1489 = shalt.err (!%p1486_p7)
}
 0x203   : > { %1079 = dma.vmem_to_hbm [thread:$0]  (%p1721_p0), %s737_s0, 64, %s739_s22, %s712_s28  }
 0x204 PF: > { %s782_s26 = sand.u32 1, %s1540_s30   ;;  %p1109_p11 = pnand %p998_p4, %p1730_p6 }
 0x205   : > { %s783_s27 = scalar_lea.sflag [#allocation5], %s782_s26 }
 0x206   : > { %p1110_p1 = pneg %p1109_p11 }
 0x208   : > { %1531 = dma.done.wait (%p1110_p1), %s783_s27, 64  }
 0x209   : > { %1533 = vsyncadd (%p1110_p1), %s783_s27, 4294967232  ;;  %s1935_s2 = sadd.s32 4294967294, %s1560_s14  }
 0x20a   : > { %s792_s23 = sand.u32 1, %s1935_s2  }
 0x20b   : > { %s793_s15 = scalar_lea.sflag [#allocation17], %s792_s23 }
 0x20c   : > { %1535 = dma.done.wait (%p1110_p1), %s793_s15, 128  }
 0x20d   : > { %1537 = vsyncadd (%p1110_p1), %s793_s15, 4294967168  ;;  %s32_s14 = sadd.s32 1, %s1560_s14   ;;  %s1936_s30 = smov %s1544_s10 }
 0x20e   : > { %p29_p0 = scmp.ge.s32.totalorder %s32_s14, 4   ;;  %s1937_s10 = smov %s1548_s11 }
 0x20f   : > { %s1938_s11 = smov %s1728_s29  ;;  %s1939_s12 = smov %s1556_s13 }
 0x210   : > { %s1940_s13 = smov %s1942_s1  ;;  %31 = sbr.rel (!%p29_p0) target bundleno = 17 (0x11), region = 158 }
 0x215   :  { %809 = vsyncpa [#allocation4], 1 }
 0x216   :  { %811 = vsyncpa [#allocation4 + $0x1], 1 }
 0x217   :  { %812 = vsyncpa [#allocation7], 1 }
 0x218   :  { %813 = vsyncpa [#allocation10], 1 }
 0x219   :  { %814 = vsyncpa [#allocation13], 1 }
 0x21a   :  { %815 = vsyncpa [#allocation5], 1 }
 0x21b   :  { %817 = vsyncpa [#allocation5 + $0x1], 1 }
 0x21c   :  { %818 = vsyncpa [#allocation17], 1 }
 0x21d   :  { %820 = vsyncpa [#allocation17 + $0x1], 1 }

</bundles_post_ra>
